<compile_context>
chip_gen: v7x
topology: tpu7x:2x2x1
jax: 0.10.0
libtpu: 0.0.40
codegen_flags: <defaults>
</compile_context>

<pallas_src>
import functools

import jax
import jax.numpy as jnp
from jax import lax
from jax.experimental import pallas as pl
from jax.experimental.pallas import tpu as pltpu


# ----------------------------- Pallas kernel --------------------------------

def _lstm_classifier_kernel(
    x_ref,            # (n_steps, TB, D)  time-major input (only the used steps)
    wih0_ref,         # (D, 4H)   layer-0 input weights (transposed)
    whh0_ref,         # (H, 4H)   layer-0 recurrent weights (transposed)
    b0_ref,           # (1, 4H)   layer-0 combined bias (b_ih + b_hh)
    w1_ref,           # (2H, 4H)  layer-1 stacked weights [W_ih1^T ; W_hh1^T]
    b1_ref,           # (1, 4H)   layer-1 combined bias
    bn_scale_ref,     # (1, H)    gamma / sqrt(running_var + eps)
    bn_shift_ref,     # (1, H)    beta - running_mean * scale
    wcls_ref,         # (H, O)    classifier weight (transposed)
    bcls_ref,         # (1, O)    classifier bias
    out_ref,          # (TB, O)   logits
    *, hidden_dim, n_steps,
):
    H = hidden_dim
    TB = out_ref.shape[0]

    # Hoist loop-invariant weight loads out of the recurrence.
    wih0 = wih0_ref[...]
    whh0 = whh0_ref[...]
    b0 = b0_ref[...]
    w1 = w1_ref[...]
    b1 = b1_ref[...]

    # Layer-0 input projection hoisted out of the serial recurrence: all n_steps
    # projections are independent of the recurrent state, so their MXU latency
    # overlaps and the loop below only does gates = xw0[t] + h @ Whh0.
    xw0 = [
        jnp.dot(x_ref[t], wih0, preferred_element_type=jnp.float32) + b0
        for t in range(n_steps)
    ]

    def gate_update(gates, c_prev):
        # PyTorch gate order [i, f, g, o].  Apply the nonlinearities full-width
        # (2 EUP pushes over the whole (TB, 4H) vreg) and slice afterwards;
        # the 32-lane slices are cheap VPU selects within a single vreg.
        sig = jax.nn.sigmoid(gates)
        tnh = jnp.tanh(gates)
        i = sig[:, 0 * H:1 * H]
        f = sig[:, 1 * H:2 * H]
        g = tnh[:, 2 * H:3 * H]
        o = sig[:, 3 * H:4 * H]
        c_new = f * c_prev + i * g
        h_new = o * jnp.tanh(c_new)
        return h_new, c_new

    h0 = jnp.zeros((TB, H), jnp.float32)
    c0 = jnp.zeros((TB, H), jnp.float32)
    h1 = jnp.zeros((TB, H), jnp.float32)
    c1 = jnp.zeros((TB, H), jnp.float32)

    # Fully unrolled recurrence (n_steps is a Python int).
    for t in range(n_steps):
        # layer 0
        g0 = xw0[t] + jnp.dot(h0, whh0, preferred_element_type=jnp.float32)
        h0, c0 = gate_update(g0, c0)
        # layer 1 (eval mode: inter-layer dropout is identity); the two matmuls
        # are fused into one via the stacked (2H, 4H) weight.
        hcat = jnp.concatenate([h0, h1], axis=1)                 # (TB, 2H)
        g1 = jnp.dot(hcat, w1, preferred_element_type=jnp.float32) + b1
        h1, c1 = gate_update(g1, c1)

    # classifier on top-layer hidden state at the middle timestep
    y = h1 * bn_scale_ref[...] + bn_shift_ref[...]               # BatchNorm1d (eval)
    y = jnp.maximum(y, 0.0)                                      # ReLU
    # eval mode: Dropout is identity
    logits = jnp.dot(y, wcls_ref[...], preferred_element_type=jnp.float32) \
        + bcls_ref[...]
    out_ref[...] = logits.astype(out_ref.dtype)


# ------------------------------- Wrapper -------------------------------------

def rnn_classifier_forward(x, params, *, concat_nframes, input_dim_per_frame,
                           hidden_dim, output_dim):
    """x: (B, concat_nframes * input_dim_per_frame) float32 -> (B, output_dim)."""
    B = x.shape[0]
    T, D, H, O = concat_nframes, input_dim_per_frame, hidden_dim, output_dim

    n_steps = T // 2 + 1                      # output[:, T//2, :] depends on 0..T//2

    # Slice to the used timesteps FIRST, then the (halved) transpose to time-major.
    x3 = x.reshape(B, T, D)[:, :n_steps, :]
    x_tm = jnp.transpose(x3, (1, 0, 2))       # (n_steps, B, D)

    # Batch tile: full batch at small B; 128-row tiles (MXU-friendly) at large B.
    TB = B if B <= 128 else 128
    assert B % TB == 0, "batch size must be divisible by the batch tile"
    grid = (B // TB,)

    def resident(shape):
        # Full-array block, same block index every grid step -> stays in VMEM.
        return pl.BlockSpec(shape, lambda b: (0,) * len(shape))

    kernel = pl.pallas_call(
        functools.partial(_lstm_classifier_kernel, hidden_dim=H, n_steps=n_steps),
        out_shape=jax.ShapeDtypeStruct((B, O), jnp.float32),
        grid_spec=pltpu.PrefetchScalarGridSpec(
            num_scalar_prefetch=0,
            grid=grid,
            in_specs=[
                pl.BlockSpec((n_steps, TB, D), lambda b: (0, b, 0)),   # x (batch-tiled)
                resident((D, 4 * H)),          # W_ih0^T
                resident((H, 4 * H)),          # W_hh0^T
                resident((1, 4 * H)),          # b0
                resident((2 * H, 4 * H)),      # [W_ih1^T ; W_hh1^T]
                resident((1, 4 * H)),          # b1
                resident((1, H)),              # bn_scale
                resident((1, H)),              # bn_shift
                resident((H, O)),              # W_cls^T
                resident((1, O)),              # b_cls
            ],
            out_specs=pl.BlockSpec((TB, O), lambda b: (b, 0)),
        ),
        compiler_params=pltpu.CompilerParams(
            dimension_semantics=("parallel",)),
    )

    return kernel(
        x_tm,
        params["wih0_T"], params["whh0_T"], params["b0"],
        params["w1_stacked"], params["b1"],
        params["bn_scale"], params["bn_shift"],
        params["wcls_T"], params["bcls"],
    )


# ------------------------- Parameter construction ----------------------------

def make_params(key, *, input_dim_per_frame, hidden_dim, output_dim):
    D, H, O = input_dim_per_frame, hidden_dim, output_dim
    k = 1.0 / jnp.sqrt(jnp.float32(H))
    keys = jax.random.split(key, 12)

    def u(kk, shape):
        return jax.random.uniform(kk, shape, jnp.float32, -k, k)

    # PyTorch gate order [i, f, g, o]; weights stored transposed for the kernel.
    wih0 = u(keys[0], (4 * H, D))
    whh0 = u(keys[1], (4 * H, H))
    bih0 = u(keys[2], (4 * H,))
    bhh0 = u(keys[3], (4 * H,))
    wih1 = u(keys[4], (4 * H, H))
    whh1 = u(keys[5], (4 * H, H))
    bih1 = u(keys[6], (4 * H,))
    bhh1 = u(keys[7], (4 * H,))

    kc = 1.0 / jnp.sqrt(jnp.float32(H))
    wcls = jax.random.uniform(keys[8], (O, H), jnp.float32, -kc, kc)
    bcls = jax.random.uniform(keys[9], (O,), jnp.float32, -kc, kc)

    # BatchNorm1d at init (eval mode): gamma=1, beta=0, running_mean=0, running_var=1
    eps = 1e-5
    gamma = jnp.ones((H,), jnp.float32)
    beta = jnp.zeros((H,), jnp.float32)
    running_mean = jnp.zeros((H,), jnp.float32)
    running_var = jnp.ones((H,), jnp.float32)
    bn_scale = gamma / jnp.sqrt(running_var + eps)
    bn_shift = beta - running_mean * bn_scale

    wih1_T = wih1.T                       # (H, 4H)
    whh1_T = whh1.T                       # (H, 4H)

    return {
        "wih0_T": wih0.T, "whh0_T": whh0.T, "b0": (bih0 + bhh0)[None, :],
        "wih1_T": wih1_T, "whh1_T": whh1_T, "b1": (bih1 + bhh1)[None, :],
        "w1_stacked": jnp.concatenate([wih1_T, whh1_T], axis=0),   # (2H, 4H)
        "bn_scale": bn_scale[None, :], "bn_shift": bn_shift[None, :],
        "wcls_T": wcls.T, "bcls": bcls[None, :],
    }


# ----------------------------- Pure-JAX reference ----------------------------

def reference_forward(x, params, *, concat_nframes, input_dim_per_frame,
                      hidden_dim, output_dim):
    B = x.shape[0]
    T, D, H = concat_nframes, input_dim_per_frame, hidden_dim
    x3 = x.reshape(B, T, D)

    def cell(xt, h, c, wihT, whhT, b):
        gates = xt @ wihT + h @ whhT + b
        i = jax.nn.sigmoid(gates[:, 0 * H:1 * H])
        f = jax.nn.sigmoid(gates[:, 1 * H:2 * H])
        g = jnp.tanh(gates[:, 2 * H:3 * H])
        o = jax.nn.sigmoid(gates[:, 3 * H:4 * H])
        c = f * c + i * g
        h = o * jnp.tanh(c)
        return h, c

    def step(carry, xt):
        h0, c0, h1, c1 = carry
        h0, c0 = cell(xt, h0, c0, params["wih0_T"], params["whh0_T"], params["b0"])
        h1, c1 = cell(h0, h1, c1, params["wih1_T"], params["whh1_T"], params["b1"])
        return (h0, c0, h1, c1), h1

    init = tuple(jnp.zeros((B, H), jnp.float32) for _ in range(4))
    _, outs = lax.scan(step, init, jnp.transpose(x3, (1, 0, 2)))
    last = outs[T // 2]                                  # (B, H)
    y = jnp.maximum(last * params["bn_scale"] + params["bn_shift"], 0.0)
    return y @ params["wcls_T"] + params["bcls"]


# ---------------------------------- Main --------------------------------------

if __name__ == "__main__":
    # small shapes consistent with the module structure
    B = 4
    input_dim_per_frame = 16
    concat_nframes = 8
    hidden_dim = 32
    output_dim = 8

    key = jax.random.PRNGKey(0)
    kx, kp = jax.random.split(key)
    x = jax.random.normal(kx, (B, concat_nframes * input_dim_per_frame), jnp.float32)
    params = make_params(kp, input_dim_per_frame=input_dim_per_frame,
                         hidden_dim=hidden_dim, output_dim=output_dim)

    out = rnn_classifier_forward(
        x, params,
        concat_nframes=concat_nframes,
        input_dim_per_frame=input_dim_per_frame,
        hidden_dim=hidden_dim,
        output_dim=output_dim,
    )
    out = jax.block_until_ready(out)

    ref = reference_forward(
        x, params,
        concat_nframes=concat_nframes,
        input_dim_per_frame=input_dim_per_frame,
        hidden_dim=hidden_dim,
        output_dim=output_dim,
    )
    assert out.shape == (B, output_dim)
    # f32 throughout; small tolerance slack for the reassociated (fused) matmuls.
    assert jnp.allclose(out, ref, atol=1e-4, rtol=1e-4), "mismatch vs reference"

    print("KERNEL_OK")
</pallas_src>

<mosaic_0001>
module attributes {stable_mosaic.version = 11 : i64} {
  func.func @_lstm_classifier_kernel(%arg0: i32, %arg1: memref<5x4x16xf32, #tpu.memory_space<vmem>>, %arg2: memref<16x128xf32, #tpu.memory_space<vmem>>, %arg3: memref<32x128xf32, #tpu.memory_space<vmem>>, %arg4: memref<1x128xf32, #tpu.memory_space<vmem>>, %arg5: memref<64x128xf32, #tpu.memory_space<vmem>>, %arg6: memref<1x128xf32, #tpu.memory_space<vmem>>, %arg7: memref<1x32xf32, #tpu.memory_space<vmem>>, %arg8: memref<1x32xf32, #tpu.memory_space<vmem>>, %arg9: memref<32x8xf32, #tpu.memory_space<vmem>>, %arg10: memref<1x8xf32, #tpu.memory_space<vmem>>, %arg11: memref<4x8xf32, #tpu.memory_space<vmem>>) attributes {dimension_semantics = [#tpu.dimension_semantics<parallel>], iteration_bounds = array<i64: 1>, scalar_prefetch = 0 : i64, scratch_operands = 0 : i64, tpu.core_type = #tpu.core_type<tc>, window_params = [{transform_indices = @transform_0, window_bounds = array<i64: 5, 4, 16>}, {pipeline_mode = #tpu.pipeline_mode<synchronous>, transform_indices = @transform_1, window_bounds = array<i64: 16, 128>}, {pipeline_mode = #tpu.pipeline_mode<synchronous>, transform_indices = @transform_2, window_bounds = array<i64: 32, 128>}, {pipeline_mode = #tpu.pipeline_mode<synchronous>, transform_indices = @transform_3, window_bounds = array<i64: 1, 128>}, {pipeline_mode = #tpu.pipeline_mode<synchronous>, transform_indices = @transform_4, window_bounds = array<i64: 64, 128>}, {pipeline_mode = #tpu.pipeline_mode<synchronous>, transform_indices = @transform_5, window_bounds = array<i64: 1, 128>}, {pipeline_mode = #tpu.pipeline_mode<synchronous>, transform_indices = @transform_6, window_bounds = array<i64: 1, 32>}, {pipeline_mode = #tpu.pipeline_mode<synchronous>, transform_indices = @transform_7, window_bounds = array<i64: 1, 32>}, {pipeline_mode = #tpu.pipeline_mode<synchronous>, transform_indices = @transform_8, window_bounds = array<i64: 32, 8>}, {pipeline_mode = #tpu.pipeline_mode<synchronous>, transform_indices = @transform_9, window_bounds = array<i64: 1, 8>}, {transform_indices = @transform_10, window_bounds = array<i64: 4, 8>}]} {
    %c0 = arith.constant 0 : index
    %c0_0 = arith.constant 0 : index
    %0 = vector.load %arg2[%c0, %c0_0] : memref<16x128xf32, #tpu.memory_space<vmem>>, vector<16x128xf32>
    %c0_1 = arith.constant 0 : index
    %c0_2 = arith.constant 0 : index
    %1 = vector.load %arg3[%c0_1, %c0_2] : memref<32x128xf32, #tpu.memory_space<vmem>>, vector<32x128xf32>
    %c0_3 = arith.constant 0 : index
    %c0_4 = arith.constant 0 : index
    %2 = vector.load %arg4[%c0_3, %c0_4] : memref<1x128xf32, #tpu.memory_space<vmem>>, vector<1x128xf32>
    %c0_5 = arith.constant 0 : index
    %c0_6 = arith.constant 0 : index
    %3 = vector.load %arg5[%c0_5, %c0_6] : memref<64x128xf32, #tpu.memory_space<vmem>>, vector<64x128xf32>
    %c0_7 = arith.constant 0 : index
    %c0_8 = arith.constant 0 : index
    %4 = vector.load %arg6[%c0_7, %c0_8] : memref<1x128xf32, #tpu.memory_space<vmem>>, vector<1x128xf32>
    %c0_9 = arith.constant 0 : index
    %c0_10 = arith.constant 0 : index
    %c0_11 = arith.constant 0 : index
    %5 = vector.load %arg1[%c0_9, %c0_10, %c0_11] : memref<5x4x16xf32, #tpu.memory_space<vmem>>, vector<1x4x16xf32>
    %6 = vector.shape_cast %5 : vector<1x4x16xf32> to vector<4x16xf32>
    %cst = arith.constant dense<0.000000e+00> : vector<4x128xf32>
    %7 = tpu.matmul %6, %0, %cst {dimension_numbers = #tpu.dot_dimension_numbers<[1], [0], [0], [1], [0, 0, 1, 1], [], []>} : vector<4x16xf32>, vector<16x128xf32>, vector<4x128xf32> -> vector<4x128xf32>
    %8 = vector.broadcast %2 : vector<1x128xf32> to vector<4x128xf32>
    %9 = arith.addf %7, %8 : vector<4x128xf32>
    %c1 = arith.constant 1 : index
    %c0_12 = arith.constant 0 : index
    %c0_13 = arith.constant 0 : index
    %10 = vector.load %arg1[%c1, %c0_12, %c0_13] : memref<5x4x16xf32, #tpu.memory_space<vmem>>, vector<1x4x16xf32>
    %11 = vector.shape_cast %10 : vector<1x4x16xf32> to vector<4x16xf32>
    %cst_14 = arith.constant dense<0.000000e+00> : vector<4x128xf32>
    %12 = tpu.matmul %11, %0, %cst_14 {dimension_numbers = #tpu.dot_dimension_numbers<[1], [0], [0], [1], [0, 0, 1, 1], [], []>} : vector<4x16xf32>, vector<16x128xf32>, vector<4x128xf32> -> vector<4x128xf32>
    %13 = vector.broadcast %2 : vector<1x128xf32> to vector<4x128xf32>
    %14 = arith.addf %12, %13 : vector<4x128xf32>
    %c2 = arith.constant 2 : index
    %c0_15 = arith.constant 0 : index
    %c0_16 = arith.constant 0 : index
    %15 = vector.load %arg1[%c2, %c0_15, %c0_16] : memref<5x4x16xf32, #tpu.memory_space<vmem>>, vector<1x4x16xf32>
    %16 = vector.shape_cast %15 : vector<1x4x16xf32> to vector<4x16xf32>
    %cst_17 = arith.constant dense<0.000000e+00> : vector<4x128xf32>
    %17 = tpu.matmul %16, %0, %cst_17 {dimension_numbers = #tpu.dot_dimension_numbers<[1], [0], [0], [1], [0, 0, 1, 1], [], []>} : vector<4x16xf32>, vector<16x128xf32>, vector<4x128xf32> -> vector<4x128xf32>
    %18 = vector.broadcast %2 : vector<1x128xf32> to vector<4x128xf32>
    %19 = arith.addf %17, %18 : vector<4x128xf32>
    %c3 = arith.constant 3 : index
    %c0_18 = arith.constant 0 : index
    %c0_19 = arith.constant 0 : index
    %20 = vector.load %arg1[%c3, %c0_18, %c0_19] : memref<5x4x16xf32, #tpu.memory_space<vmem>>, vector<1x4x16xf32>
    %21 = vector.shape_cast %20 : vector<1x4x16xf32> to vector<4x16xf32>
    %cst_20 = arith.constant dense<0.000000e+00> : vector<4x128xf32>
    %22 = tpu.matmul %21, %0, %cst_20 {dimension_numbers = #tpu.dot_dimension_numbers<[1], [0], [0], [1], [0, 0, 1, 1], [], []>} : vector<4x16xf32>, vector<16x128xf32>, vector<4x128xf32> -> vector<4x128xf32>
    %23 = vector.broadcast %2 : vector<1x128xf32> to vector<4x128xf32>
    %24 = arith.addf %22, %23 : vector<4x128xf32>
    %c4 = arith.constant 4 : index
    %c0_21 = arith.constant 0 : index
    %c0_22 = arith.constant 0 : index
    %25 = vector.load %arg1[%c4, %c0_21, %c0_22] : memref<5x4x16xf32, #tpu.memory_space<vmem>>, vector<1x4x16xf32>
    %26 = vector.shape_cast %25 : vector<1x4x16xf32> to vector<4x16xf32>
    %cst_23 = arith.constant dense<0.000000e+00> : vector<4x128xf32>
    %27 = tpu.matmul %26, %0, %cst_23 {dimension_numbers = #tpu.dot_dimension_numbers<[1], [0], [0], [1], [0, 0, 1, 1], [], []>} : vector<4x16xf32>, vector<16x128xf32>, vector<4x128xf32> -> vector<4x128xf32>
    %28 = vector.broadcast %2 : vector<1x128xf32> to vector<4x128xf32>
    %29 = arith.addf %27, %28 : vector<4x128xf32>
    %cst_24 = arith.constant 0.000000e+00 : f32
    %30 = vector.broadcast %cst_24 : f32 to vector<4x32xf32>
    %cst_25 = arith.constant 0.000000e+00 : f32
    %31 = vector.broadcast %cst_25 : f32 to vector<4x32xf32>
    %cst_26 = arith.constant 0.000000e+00 : f32
    %32 = vector.broadcast %cst_26 : f32 to vector<4x32xf32>
    %cst_27 = arith.constant 0.000000e+00 : f32
    %33 = vector.broadcast %cst_27 : f32 to vector<4x32xf32>
    %cst_28 = arith.constant dense<0.000000e+00> : vector<4x128xf32>
    %34 = tpu.matmul %30, %1, %cst_28 {dimension_numbers = #tpu.dot_dimension_numbers<[1], [0], [0], [1], [0, 0, 1, 1], [], []>} : vector<4x32xf32>, vector<32x128xf32>, vector<4x128xf32> -> vector<4x128xf32>
    %35 = arith.addf %9, %34 : vector<4x128xf32>
    %36 = arith.negf %35 : vector<4x128xf32>
    %37 = math.exp %36 : vector<4x128xf32>
    %cst_29 = arith.constant 1.000000e+00 : f32
    %38 = vector.broadcast %cst_29 : f32 to vector<4x128xf32>
    %39 = arith.addf %38, %37 : vector<4x128xf32>
    %40 = arith.divf %38, %39 : vector<4x128xf32>
    %41 = math.tanh %35 : vector<4x128xf32>
    %42 = vector.extract_strided_slice %40 {offsets = [0, 0], sizes = [4, 32], strides = [1, 1]} : vector<4x128xf32> to vector<4x32xf32>
    %43 = vector.extract_strided_slice %40 {offsets = [0, 32], sizes = [4, 32], strides = [1, 1]} : vector<4x128xf32> to vector<4x32xf32>
    %44 = vector.extract_strided_slice %41 {offsets = [0, 64], sizes = [4, 32], strides = [1, 1]} : vector<4x128xf32> to vector<4x32xf32>
    %45 = vector.extract_strided_slice %40 {offsets = [0, 96], sizes = [4, 32], strides = [1, 1]} : vector<4x128xf32> to vector<4x32xf32>
    %46 = arith.mulf %43, %31 : vector<4x32xf32>
    %47 = arith.mulf %42, %44 : vector<4x32xf32>
    %48 = arith.addf %46, %47 : vector<4x32xf32>
    %49 = math.tanh %48 : vector<4x32xf32>
    %50 = arith.mulf %45, %49 : vector<4x32xf32>
    %51 = tpu.concatenate %50, %32 in 1 : vector<4x32xf32>, vector<4x32xf32> -> vector<4x64xf32>
    %cst_30 = arith.constant dense<0.000000e+00> : vector<4x128xf32>
    %52 = tpu.matmul %51, %3, %cst_30 {dimension_numbers = #tpu.dot_dimension_numbers<[1], [0], [0], [1], [0, 0, 1, 1], [], []>} : vector<4x64xf32>, vector<64x128xf32>, vector<4x128xf32> -> vector<4x128xf32>
    %53 = vector.broadcast %4 : vector<1x128xf32> to vector<4x128xf32>
    %54 = arith.addf %52, %53 : vector<4x128xf32>
    %55 = arith.negf %54 : vector<4x128xf32>
    %56 = math.exp %55 : vector<4x128xf32>
    %cst_31 = arith.constant 1.000000e+00 : f32
    %57 = vector.broadcast %cst_31 : f32 to vector<4x128xf32>
    %58 = arith.addf %57, %56 : vector<4x128xf32>
    %59 = arith.divf %57, %58 : vector<4x128xf32>
    %60 = math.tanh %54 : vector<4x128xf32>
    %61 = vector.extract_strided_slice %59 {offsets = [0, 0], sizes = [4, 32], strides = [1, 1]} : vector<4x128xf32> to vector<4x32xf32>
    %62 = vector.extract_strided_slice %59 {offsets = [0, 32], sizes = [4, 32], strides = [1, 1]} : vector<4x128xf32> to vector<4x32xf32>
    %63 = vector.extract_strided_slice %60 {offsets = [0, 64], sizes = [4, 32], strides = [1, 1]} : vector<4x128xf32> to vector<4x32xf32>
    %64 = vector.extract_strided_slice %59 {offsets = [0, 96], sizes = [4, 32], strides = [1, 1]} : vector<4x128xf32> to vector<4x32xf32>
    %65 = arith.mulf %62, %33 : vector<4x32xf32>
    %66 = arith.mulf %61, %63 : vector<4x32xf32>
    %67 = arith.addf %65, %66 : vector<4x32xf32>
    %68 = math.tanh %67 : vector<4x32xf32>
    %69 = arith.mulf %64, %68 : vector<4x32xf32>
    %cst_32 = arith.constant dense<0.000000e+00> : vector<4x128xf32>
    %70 = tpu.matmul %50, %1, %cst_32 {dimension_numbers = #tpu.dot_dimension_numbers<[1], [0], [0], [1], [0, 0, 1, 1], [], []>} : vector<4x32xf32>, vector<32x128xf32>, vector<4x128xf32> -> vector<4x128xf32>
    %71 = arith.addf %14, %70 : vector<4x128xf32>
    %72 = arith.negf %71 : vector<4x128xf32>
    %73 = math.exp %72 : vector<4x128xf32>
    %cst_33 = arith.constant 1.000000e+00 : f32
    %74 = vector.broadcast %cst_33 : f32 to vector<4x128xf32>
    %75 = arith.addf %74, %73 : vector<4x128xf32>
    %76 = arith.divf %74, %75 : vector<4x128xf32>
    %77 = math.tanh %71 : vector<4x128xf32>
    %78 = vector.extract_strided_slice %76 {offsets = [0, 0], sizes = [4, 32], strides = [1, 1]} : vector<4x128xf32> to vector<4x32xf32>
    %79 = vector.extract_strided_slice %76 {offsets = [0, 32], sizes = [4, 32], strides = [1, 1]} : vector<4x128xf32> to vector<4x32xf32>
    %80 = vector.extract_strided_slice %77 {offsets = [0, 64], sizes = [4, 32], strides = [1, 1]} : vector<4x128xf32> to vector<4x32xf32>
    %81 = vector.extract_strided_slice %76 {offsets = [0, 96], sizes = [4, 32], strides = [1, 1]} : vector<4x128xf32> to vector<4x32xf32>
    %82 = arith.mulf %79, %48 : vector<4x32xf32>
    %83 = arith.mulf %78, %80 : vector<4x32xf32>
    %84 = arith.addf %82, %83 : vector<4x32xf32>
    %85 = math.tanh %84 : vector<4x32xf32>
    %86 = arith.mulf %81, %85 : vector<4x32xf32>
    %87 = tpu.concatenate %86, %69 in 1 : vector<4x32xf32>, vector<4x32xf32> -> vector<4x64xf32>
    %cst_34 = arith.constant dense<0.000000e+00> : vector<4x128xf32>
    %88 = tpu.matmul %87, %3, %cst_34 {dimension_numbers = #tpu.dot_dimension_numbers<[1], [0], [0], [1], [0, 0, 1, 1], [], []>} : vector<4x64xf32>, vector<64x128xf32>, vector<4x128xf32> -> vector<4x128xf32>
    %89 = vector.broadcast %4 : vector<1x128xf32> to vector<4x128xf32>
    %90 = arith.addf %88, %89 : vector<4x128xf32>
    %91 = arith.negf %90 : vector<4x128xf32>
    %92 = math.exp %91 : vector<4x128xf32>
    %cst_35 = arith.constant 1.000000e+00 : f32
    %93 = vector.broadcast %cst_35 : f32 to vector<4x128xf32>
    %94 = arith.addf %93, %92 : vector<4x128xf32>
    %95 = arith.divf %93, %94 : vector<4x128xf32>
    %96 = math.tanh %90 : vector<4x128xf32>
    %97 = vector.extract_strided_slice %95 {offsets = [0, 0], sizes = [4, 32], strides = [1, 1]} : vector<4x128xf32> to vector<4x32xf32>
    %98 = vector.extract_strided_slice %95 {offsets = [0, 32], sizes = [4, 32], strides = [1, 1]} : vector<4x128xf32> to vector<4x32xf32>
    %99 = vector.extract_strided_slice %96 {offsets = [0, 64], sizes = [4, 32], strides = [1, 1]} : vector<4x128xf32> to vector<4x32xf32>
    %100 = vector.extract_strided_slice %95 {offsets = [0, 96], sizes = [4, 32], strides = [1, 1]} : vector<4x128xf32> to vector<4x32xf32>
    %101 = arith.mulf %98, %67 : vector<4x32xf32>
    %102 = arith.mulf %97, %99 : vector<4x32xf32>
    %103 = arith.addf %101, %102 : vector<4x32xf32>
    %104 = math.tanh %103 : vector<4x32xf32>
    %105 = arith.mulf %100, %104 : vector<4x32xf32>
    %cst_36 = arith.constant dense<0.000000e+00> : vector<4x128xf32>
    %106 = tpu.matmul %86, %1, %cst_36 {dimension_numbers = #tpu.dot_dimension_numbers<[1], [0], [0], [1], [0, 0, 1, 1], [], []>} : vector<4x32xf32>, vector<32x128xf32>, vector<4x128xf32> -> vector<4x128xf32>
    %107 = arith.addf %19, %106 : vector<4x128xf32>
    %108 = arith.negf %107 : vector<4x128xf32>
    %109 = math.exp %108 : vector<4x128xf32>
    %cst_37 = arith.constant 1.000000e+00 : f32
    %110 = vector.broadcast %cst_37 : f32 to vector<4x128xf32>
    %111 = arith.addf %110, %109 : vector<4x128xf32>
    %112 = arith.divf %110, %111 : vector<4x128xf32>
    %113 = math.tanh %107 : vector<4x128xf32>
    %114 = vector.extract_strided_slice %112 {offsets = [0, 0], sizes = [4, 32], strides = [1, 1]} : vector<4x128xf32> to vector<4x32xf32>
    %115 = vector.extract_strided_slice %112 {offsets = [0, 32], sizes = [4, 32], strides = [1, 1]} : vector<4x128xf32> to vector<4x32xf32>
    %116 = vector.extract_strided_slice %113 {offsets = [0, 64], sizes = [4, 32], strides = [1, 1]} : vector<4x128xf32> to vector<4x32xf32>
    %117 = vector.extract_strided_slice %112 {offsets = [0, 96], sizes = [4, 32], strides = [1, 1]} : vector<4x128xf32> to vector<4x32xf32>
    %118 = arith.mulf %115, %84 : vector<4x32xf32>
    %119 = arith.mulf %114, %116 : vector<4x32xf32>
    %120 = arith.addf %118, %119 : vector<4x32xf32>
    %121 = math.tanh %120 : vector<4x32xf32>
    %122 = arith.mulf %117, %121 : vector<4x32xf32>
    %123 = tpu.concatenate %122, %105 in 1 : vector<4x32xf32>, vector<4x32xf32> -> vector<4x64xf32>
    %cst_38 = arith.constant dense<0.000000e+00> : vector<4x128xf32>
    %124 = tpu.matmul %123, %3, %cst_38 {dimension_numbers = #tpu.dot_dimension_numbers<[1], [0], [0], [1], [0, 0, 1, 1], [], []>} : vector<4x64xf32>, vector<64x128xf32>, vector<4x128xf32> -> vector<4x128xf32>
    %125 = vector.broadcast %4 : vector<1x128xf32> to vector<4x128xf32>
    %126 = arith.addf %124, %125 : vector<4x128xf32>
    %127 = arith.negf %126 : vector<4x128xf32>
    %128 = math.exp %127 : vector<4x128xf32>
    %cst_39 = arith.constant 1.000000e+00 : f32
    %129 = vector.broadcast %cst_39 : f32 to vector<4x128xf32>
    %130 = arith.addf %129, %128 : vector<4x128xf32>
    %131 = arith.divf %129, %130 : vector<4x128xf32>
    %132 = math.tanh %126 : vector<4x128xf32>
    %133 = vector.extract_strided_slice %131 {offsets = [0, 0], sizes = [4, 32], strides = [1, 1]} : vector<4x128xf32> to vector<4x32xf32>
    %134 = vector.extract_strided_slice %131 {offsets = [0, 32], sizes = [4, 32], strides = [1, 1]} : vector<4x128xf32> to vector<4x32xf32>
    %135 = vector.extract_strided_slice %132 {offsets = [0, 64], sizes = [4, 32], strides = [1, 1]} : vector<4x128xf32> to vector<4x32xf32>
    %136 = vector.extract_strided_slice %131 {offsets = [0, 96], sizes = [4, 32], strides = [1, 1]} : vector<4x128xf32> to vector<4x32xf32>
    %137 = arith.mulf %134, %103 : vector<4x32xf32>
    %138 = arith.mulf %133, %135 : vector<4x32xf32>
    %139 = arith.addf %137, %138 : vector<4x32xf32>
    %140 = math.tanh %139 : vector<4x32xf32>
    %141 = arith.mulf %136, %140 : vector<4x32xf32>
    %cst_40 = arith.constant dense<0.000000e+00> : vector<4x128xf32>
    %142 = tpu.matmul %122, %1, %cst_40 {dimension_numbers = #tpu.dot_dimension_numbers<[1], [0], [0], [1], [0, 0, 1, 1], [], []>} : vector<4x32xf32>, vector<32x128xf32>, vector<4x128xf32> -> vector<4x128xf32>
    %143 = arith.addf %24, %142 : vector<4x128xf32>
    %144 = arith.negf %143 : vector<4x128xf32>
    %145 = math.exp %144 : vector<4x128xf32>
    %cst_41 = arith.constant 1.000000e+00 : f32
    %146 = vector.broadcast %cst_41 : f32 to vector<4x128xf32>
    %147 = arith.addf %146, %145 : vector<4x128xf32>
    %148 = arith.divf %146, %147 : vector<4x128xf32>
    %149 = math.tanh %143 : vector<4x128xf32>
    %150 = vector.extract_strided_slice %148 {offsets = [0, 0], sizes = [4, 32], strides = [1, 1]} : vector<4x128xf32> to vector<4x32xf32>
    %151 = vector.extract_strided_slice %148 {offsets = [0, 32], sizes = [4, 32], strides = [1, 1]} : vector<4x128xf32> to vector<4x32xf32>
    %152 = vector.extract_strided_slice %149 {offsets = [0, 64], sizes = [4, 32], strides = [1, 1]} : vector<4x128xf32> to vector<4x32xf32>
    %153 = vector.extract_strided_slice %148 {offsets = [0, 96], sizes = [4, 32], strides = [1, 1]} : vector<4x128xf32> to vector<4x32xf32>
    %154 = arith.mulf %151, %120 : vector<4x32xf32>
    %155 = arith.mulf %150, %152 : vector<4x32xf32>
    %156 = arith.addf %154, %155 : vector<4x32xf32>
    %157 = math.tanh %156 : vector<4x32xf32>
    %158 = arith.mulf %153, %157 : vector<4x32xf32>
    %159 = tpu.concatenate %158, %141 in 1 : vector<4x32xf32>, vector<4x32xf32> -> vector<4x64xf32>
    %cst_42 = arith.constant dense<0.000000e+00> : vector<4x128xf32>
    %160 = tpu.matmul %159, %3, %cst_42 {dimension_numbers = #tpu.dot_dimension_numbers<[1], [0], [0], [1], [0, 0, 1, 1], [], []>} : vector<4x64xf32>, vector<64x128xf32>, vector<4x128xf32> -> vector<4x128xf32>
    %161 = vector.broadcast %4 : vector<1x128xf32> to vector<4x128xf32>
    %162 = arith.addf %160, %161 : vector<4x128xf32>
    %163 = arith.negf %162 : vector<4x128xf32>
    %164 = math.exp %163 : vector<4x128xf32>
    %cst_43 = arith.constant 1.000000e+00 : f32
    %165 = vector.broadcast %cst_43 : f32 to vector<4x128xf32>
    %166 = arith.addf %165, %164 : vector<4x128xf32>
    %167 = arith.divf %165, %166 : vector<4x128xf32>
    %168 = math.tanh %162 : vector<4x128xf32>
    %169 = vector.extract_strided_slice %167 {offsets = [0, 0], sizes = [4, 32], strides = [1, 1]} : vector<4x128xf32> to vector<4x32xf32>
    %170 = vector.extract_strided_slice %167 {offsets = [0, 32], sizes = [4, 32], strides = [1, 1]} : vector<4x128xf32> to vector<4x32xf32>
    %171 = vector.extract_strided_slice %168 {offsets = [0, 64], sizes = [4, 32], strides = [1, 1]} : vector<4x128xf32> to vector<4x32xf32>
    %172 = vector.extract_strided_slice %167 {offsets = [0, 96], sizes = [4, 32], strides = [1, 1]} : vector<4x128xf32> to vector<4x32xf32>
    %173 = arith.mulf %170, %139 : vector<4x32xf32>
    %174 = arith.mulf %169, %171 : vector<4x32xf32>
    %175 = arith.addf %173, %174 : vector<4x32xf32>
    %176 = math.tanh %175 : vector<4x32xf32>
    %177 = arith.mulf %172, %176 : vector<4x32xf32>
    %cst_44 = arith.constant dense<0.000000e+00> : vector<4x128xf32>
    %178 = tpu.matmul %158, %1, %cst_44 {dimension_numbers = #tpu.dot_dimension_numbers<[1], [0], [0], [1], [0, 0, 1, 1], [], []>} : vector<4x32xf32>, vector<32x128xf32>, vector<4x128xf32> -> vector<4x128xf32>
    %179 = arith.addf %29, %178 : vector<4x128xf32>
    %180 = arith.negf %179 : vector<4x128xf32>
    %181 = math.exp %180 : vector<4x128xf32>
    %cst_45 = arith.constant 1.000000e+00 : f32
    %182 = vector.broadcast %cst_45 : f32 to vector<4x128xf32>
    %183 = arith.addf %182, %181 : vector<4x128xf32>
    %184 = arith.divf %182, %183 : vector<4x128xf32>
    %185 = math.tanh %179 : vector<4x128xf32>
    %186 = vector.extract_strided_slice %184 {offsets = [0, 0], sizes = [4, 32], strides = [1, 1]} : vector<4x128xf32> to vector<4x32xf32>
    %187 = vector.extract_strided_slice %184 {offsets = [0, 32], sizes = [4, 32], strides = [1, 1]} : vector<4x128xf32> to vector<4x32xf32>
    %188 = vector.extract_strided_slice %185 {offsets = [0, 64], sizes = [4, 32], strides = [1, 1]} : vector<4x128xf32> to vector<4x32xf32>
    %189 = vector.extract_strided_slice %184 {offsets = [0, 96], sizes = [4, 32], strides = [1, 1]} : vector<4x128xf32> to vector<4x32xf32>
    %190 = arith.mulf %187, %156 : vector<4x32xf32>
    %191 = arith.mulf %186, %188 : vector<4x32xf32>
    %192 = arith.addf %190, %191 : vector<4x32xf32>
    %193 = math.tanh %192 : vector<4x32xf32>
    %194 = arith.mulf %189, %193 : vector<4x32xf32>
    %195 = tpu.concatenate %194, %177 in 1 : vector<4x32xf32>, vector<4x32xf32> -> vector<4x64xf32>
    %cst_46 = arith.constant dense<0.000000e+00> : vector<4x128xf32>
    %196 = tpu.matmul %195, %3, %cst_46 {dimension_numbers = #tpu.dot_dimension_numbers<[1], [0], [0], [1], [0, 0, 1, 1], [], []>} : vector<4x64xf32>, vector<64x128xf32>, vector<4x128xf32> -> vector<4x128xf32>
    %197 = vector.broadcast %4 : vector<1x128xf32> to vector<4x128xf32>
    %198 = arith.addf %196, %197 : vector<4x128xf32>
    %199 = arith.negf %198 : vector<4x128xf32>
    %200 = math.exp %199 : vector<4x128xf32>
    %cst_47 = arith.constant 1.000000e+00 : f32
    %201 = vector.broadcast %cst_47 : f32 to vector<4x128xf32>
    %202 = arith.addf %201, %200 : vector<4x128xf32>
    %203 = arith.divf %201, %202 : vector<4x128xf32>
    %204 = math.tanh %198 : vector<4x128xf32>
    %205 = vector.extract_strided_slice %203 {offsets = [0, 0], sizes = [4, 32], strides = [1, 1]} : vector<4x128xf32> to vector<4x32xf32>
    %206 = vector.extract_strided_slice %203 {offsets = [0, 32], sizes = [4, 32], strides = [1, 1]} : vector<4x128xf32> to vector<4x32xf32>
    %207 = vector.extract_strided_slice %204 {offsets = [0, 64], sizes = [4, 32], strides = [1, 1]} : vector<4x128xf32> to vector<4x32xf32>
    %208 = vector.extract_strided_slice %203 {offsets = [0, 96], sizes = [4, 32], strides = [1, 1]} : vector<4x128xf32> to vector<4x32xf32>
    %209 = arith.mulf %206, %175 : vector<4x32xf32>
    %210 = arith.mulf %205, %207 : vector<4x32xf32>
    %211 = arith.addf %209, %210 : vector<4x32xf32>
    %212 = math.tanh %211 : vector<4x32xf32>
    %213 = arith.mulf %208, %212 : vector<4x32xf32>
    %c0_48 = arith.constant 0 : index
    %c0_49 = arith.constant 0 : index
    %214 = vector.load %arg7[%c0_48, %c0_49] : memref<1x32xf32, #tpu.memory_space<vmem>>, vector<1x32xf32>
    %215 = vector.broadcast %214 : vector<1x32xf32> to vector<4x32xf32>
    %216 = arith.mulf %213, %215 : vector<4x32xf32>
    %c0_50 = arith.constant 0 : index
    %c0_51 = arith.constant 0 : index
    %217 = vector.load %arg8[%c0_50, %c0_51] : memref<1x32xf32, #tpu.memory_space<vmem>>, vector<1x32xf32>
    %218 = vector.broadcast %217 : vector<1x32xf32> to vector<4x32xf32>
    %219 = arith.addf %216, %218 : vector<4x32xf32>
    %cst_52 = arith.constant 0.000000e+00 : f32
    %220 = vector.broadcast %cst_52 : f32 to vector<4x32xf32>
    %221 = arith.maximumf %219, %220 : vector<4x32xf32>
    %c0_53 = arith.constant 0 : index
    %c0_54 = arith.constant 0 : index
    %222 = vector.load %arg9[%c0_53, %c0_54] : memref<32x8xf32, #tpu.memory_space<vmem>>, vector<32x8xf32>
    %cst_55 = arith.constant dense<0.000000e+00> : vector<4x8xf32>
    %223 = tpu.matmul %221, %222, %cst_55 {dimension_numbers = #tpu.dot_dimension_numbers<[1], [0], [0], [1], [0, 0, 1, 1], [], []>} : vector<4x32xf32>, vector<32x8xf32>, vector<4x8xf32> -> vector<4x8xf32>
    %c0_56 = arith.constant 0 : index
    %c0_57 = arith.constant 0 : index
    %224 = vector.load %arg10[%c0_56, %c0_57] : memref<1x8xf32, #tpu.memory_space<vmem>>, vector<1x8xf32>
    %225 = vector.broadcast %224 : vector<1x8xf32> to vector<4x8xf32>
    %226 = arith.addf %223, %225 : vector<4x8xf32>
    %c0_58 = arith.constant 0 : index
    %c0_59 = arith.constant 0 : index
    %227 = vector.load %arg11[%c0_58, %c0_59] : memref<4x8xf32, #tpu.memory_space<vmem>>, vector<4x8xf32>
    tpu.vector_store %arg11[%c0_58, %c0_59], %226 {strides = array<i32>} : memref<4x8xf32, #tpu.memory_space<vmem>>, vector<4x8xf32>,
    return
  }
  func.func @transform_0(%arg0: i32) -> (i32, i32, i32) {
    %c0_i32 = arith.constant 0 : i32
    %c0_i32_0 = arith.constant 0 : i32
    %c0_i32_1 = arith.constant 0 : i32
    return %c0_i32, %arg0, %c0_i32_0 : i32, i32, i32
  }
  func.func @transform_1(%arg0: i32) -> (i32, i32) {
    %c0_i32 = arith.constant 0 : i32
    %c0_i32_0 = arith.constant 0 : i32
    %c0_i32_1 = arith.constant 0 : i32
    return %c0_i32, %c0_i32_0 : i32, i32
  }
  func.func @transform_2(%arg0: i32) -> (i32, i32) {
    %c0_i32 = arith.constant 0 : i32
    %c0_i32_0 = arith.constant 0 : i32
    %c0_i32_1 = arith.constant 0 : i32
    return %c0_i32, %c0_i32_0 : i32, i32
  }
  func.func @transform_3(%arg0: i32) -> (i32, i32) {
    %c0_i32 = arith.constant 0 : i32
    %c0_i32_0 = arith.constant 0 : i32
    %c0_i32_1 = arith.constant 0 : i32
    return %c0_i32, %c0_i32_0 : i32, i32
  }
  func.func @transform_4(%arg0: i32) -> (i32, i32) {
    %c0_i32 = arith.constant 0 : i32
    %c0_i32_0 = arith.constant 0 : i32
    %c0_i32_1 = arith.constant 0 : i32
    return %c0_i32, %c0_i32_0 : i32, i32
  }
  func.func @transform_5(%arg0: i32) -> (i32, i32) {
    %c0_i32 = arith.constant 0 : i32
    %c0_i32_0 = arith.constant 0 : i32
    %c0_i32_1 = arith.constant 0 : i32
    return %c0_i32, %c0_i32_0 : i32, i32
  }
  func.func @transform_6(%arg0: i32) -> (i32, i32) {
    %c0_i32 = arith.constant 0 : i32
    %c0_i32_0 = arith.constant 0 : i32
    %c0_i32_1 = arith.constant 0 : i32
    return %c0_i32, %c0_i32_0 : i32, i32
  }
  func.func @transform_7(%arg0: i32) -> (i32, i32) {
    %c0_i32 = arith.constant 0 : i32
    %c0_i32_0 = arith.constant 0 : i32
    %c0_i32_1 = arith.constant 0 : i32
    return %c0_i32, %c0_i32_0 : i32, i32
  }
  func.func @transform_8(%arg0: i32) -> (i32, i32) {
    %c0_i32 = arith.constant 0 : i32
    %c0_i32_0 = arith.constant 0 : i32
    %c0_i32_1 = arith.constant 0 : i32
    return %c0_i32, %c0_i32_0 : i32, i32
  }
  func.func @transform_9(%arg0: i32) -> (i32, i32) {
    %c0_i32 = arith.constant 0 : i32
    %c0_i32_0 = arith.constant 0 : i32
    %c0_i32_1 = arith.constant 0 : i32
    return %c0_i32, %c0_i32_0 : i32, i32
  }
  func.func @transform_10(%arg0: i32) -> (i32, i32) {
    %c0_i32 = arith.constant 0 : i32
    %c0_i32_0 = arith.constant 0 : i32
    return %arg0, %c0_i32 : i32, i32
  }
}

</mosaic_0001>

<bundles_post_ra>
// kernel: tpu_custom_call.1
= control target key start
LH: loop header
LB: loop body
LE: loop exit
PB: predicated region body
PF: predicated region fallthrough
CT: control target
= control target key end

     0   :  { %15 = vsyncpa [#allocation3], 0  ;;  %s2617_s0 = inlined_call_operand.hbm [shape: f32[5,4,16], index: 0, kind: input, shape index: {}]   ;;  %s2618_s1 = inlined_call_operand.hbm [shape: f32[16,128], index: 1, kind: input, shape index: {}]   ;;  %s2619_s2 = inlined_call_operand.vmem [shape: f32[32,128], index: 2, kind: input, shape index: {}]   ;;  %s2620_s3 = inlined_call_operand.vmem [shape: f32[1,128], index: 3, kind: input, shape index: {}]   ;;  %s2621_s4 = inlined_call_operand.hbm [shape: f32[64,128], index: 4, kind: input, shape index: {}]   ;;  %s2622_s5 = inlined_call_operand.vmem [shape: f32[1,128], index: 5, kind: input, shape index: {}]   ;;  %s2623_s6 = inlined_call_operand.vmem [shape: f32[1,32], index: 6, kind: input, shape index: {}]   ;;  %s2624_s7 = inlined_call_operand.vmem [shape: f32[1,32], index: 7, kind: input, shape index: {}]   ;;  %s2625_s8 = inlined_call_operand.vmem [shape: f32[32,8], index: 8, kind: input, shape index: {}]   ;;  %s2626_s9 = inlined_call_operand.vmem [shape: f32[1,8], index: 9, kind: input, shape index: {}]   ;;  %s2627_s10 = inlined_call_operand.hbm [shape: f32[4,8], index: 10, kind: output, shape index: {}]  }
   0x1   :  { %16 = vsyncpa [#allocation6], 0 }
   0x2   :  { %17 = vsyncpa [#allocation4], 0  ;;  %s2248_s13 = smov [#allocation5]   ;;  %s2154_s17 = scalar_lea.hbm %s2618_s1, 256 }
   0x3   :  { %s35_s14 = sshll.u32 %s2248_s13, 4  ;;  %p2155_p0 = scmp.ne.s32.totalorder %s2618_s1, %s2154_s17  ;;  %s36_s14 = int_to_ptr.vmem [resolvable:$true] %s35_s14 }
   0x4   :  { %p2158_p1 = scmp.lt.u32.totalorder %s2154_s17, %s2618_s1 }
   0x6   :  { %p2160_p2 = pnand %p2158_p1, %p2155_p0 }
   0x8   :  { %2163 = shalt.err (!%p2160_p2)
}
   0x9   :  { %s2164_s22 = scalar_lea.vmem %s36_s14, 256  ;;  %p2169_p4 = scmp.lt.s32.totalorder %s36_s14, %s36_s14 }
   0xa   :  { %p2165_p3 = scmp.ne.s32.totalorder %s36_s14, %s2164_s22  ;;  %p2170_p5 = scmp.lt.s32.totalorder %s2164_s22, %s2164_s22 }
   0xc   :  { %p2171_p6 = por %p2170_p5, %p2169_p4 }
   0xe   :  { %p2172_p7 = pnand %p2171_p6, %p2165_p3 }
  0x10   :  { %2175 = shalt.err (!%p2172_p7)
}
  0x11   :  { %s2249_s23 = smov 128   ;;  %s2250_s24 = smov 8  }
  0x12   :  { %41 = dma.hbm_to_vmem [thread:$0]  %s2618_s1, 256, %s36_s14, [#allocation6], %s2249_s23, %s2249_s23, %s2250_s24  }
  0x13   :  { %s2251_s27 = smov [#allocation2]   ;;  %s2176_s11 = scalar_lea.hbm %s2617_s0, 320 }
  0x14   :  { %s23_s28 = sshll.u32 %s2251_s27, 4  ;;  %p2177_p8 = scmp.ne.s32.totalorder %s2617_s0, %s2176_s11  ;;  %s24_s28 = int_to_ptr.vmem [resolvable:$true] %s23_s28 }
  0x15   :  { %p2180_p9 = scmp.lt.u32.totalorder %s2176_s11, %s2617_s0 }
  0x17   :  { %p2182_p10 = pnand %p2180_p9, %p2177_p8 }
  0x19   :  { %2185 = shalt.err (!%p2182_p10)
}
  0x1a   :  { %s2186_s17 = scalar_lea.vmem %s24_s28, 320  ;;  %p2191_p12 = scmp.lt.s32.totalorder %s24_s28, %s24_s28 }
  0x1b   :  { %p2187_p11 = scmp.ne.s32.totalorder %s24_s28, %s2186_s17  ;;  %p2192_p13 = scmp.lt.s32.totalorder %s2186_s17, %s2186_s17 }
  0x1d   :  { %p2193_p0 = por %p2192_p13, %p2191_p12 }
  0x1f   :  { %p2194_p1 = pnand %p2193_p0, %p2187_p11 }
  0x21   :  { %2197 = shalt.err (!%p2194_p1)
}
  0x22   :  { %s2252_s1 = smov 64   ;;  %s2253_s14 = smov 4  }
  0x23   :  { %29 = dma.hbm_to_vmem [thread:$0]  %s2617_s0, 320, %s24_s28, [#allocation3], %s2252_s1, %s2252_s1, %s2253_s14  }
  0x24   :  { %s2254_s20 = smov [#allocation7]   ;;  %s2198_s26 = scalar_lea.hbm %s2621_s4, 1024 }
  0x25   :  { %s51_s21 = sshll.u32 %s2254_s20, 4  ;;  %p2199_p2 = scmp.ne.s32.totalorder %s2621_s4, %s2198_s26  ;;  %s52_s21 = int_to_ptr.vmem [resolvable:$true] %s51_s21 }
  0x26   :  { %p2202_p3 = scmp.lt.u32.totalorder %s2198_s26, %s2621_s4 }
  0x28   :  { %p2204_p4 = pnand %p2202_p3, %p2199_p2 }
  0x2a   :  { %2207 = shalt.err (!%p2204_p4)
}
  0x2b   :  { %s2208_s12 = scalar_lea.vmem %s52_s21, 1024  ;;  %p2213_p6 = scmp.lt.s32.totalorder %s52_s21, %s52_s21 }
  0x2c   :  { %p2209_p5 = scmp.ne.s32.totalorder %s52_s21, %s2208_s12  ;;  %p2214_p7 = scmp.lt.s32.totalorder %s2208_s12, %s2208_s12 }
  0x2e   :  { %p2215_p8 = por %p2214_p7, %p2213_p6 }
  0x30   :  { %p2216_p9 = pnand %p2215_p8, %p2209_p5 }
  0x32   :  { %2219 = shalt.err (!%p2216_p9)
}
  0x33   :  { %57 = dma.hbm_to_vmem [thread:$0]  %s2621_s4, 1024, %s52_s21, [#allocation6], %s2249_s23, %s2249_s23, %s2250_s24  }
  0x34   :  { %2242 = dma.done.wait [#allocation3], 320  }
  0x35   :  { %2243 = vsyncadd [#allocation3], 4294966976 }
  0x36   :  { %2244 = dma.done.wait [#allocation6], 1280  }
  0x37   :  { %2245 = vsyncadd [#allocation6], 4294966016  ;;  %v2255_v0 = vmov 0.0|0.0   ;;  %vm2256_vm0 = vmmov 0   ;;  %v2257_v1 = vmov 0.0   ;;  %v77_v2 = vld [vmem:[#allocation5] sm:$0xff] }
  0x38   :  { %1935 = vmatprep.subr.bf16.mxu0 %v2255_v0  ;;  %1743 = vmatprep.mubr.msk.f32.mxu0 %vm2256_vm0, %v2257_v1  ;;  %v78_v3 = vld [vmem:[#allocation5 + $0x8] sm:$0xff]  ;;  %vm100_vm1 = vcmask 130048   ;;  %v250_v6 = vld [vmem:[#allocation2 + $0x8] sm:$0xf]  ;;  %v400_v9 = vld [vmem:[#allocation2 + $0x10] sm:$0xf] }
  0x39   :  { %1938 = vmatprep.subr.bf16.mxu1 %v2255_v0  ;;  %1750 = vmatprep.mubr.msk.f32.mxu1 %vm2256_vm0, %v2257_v1  ;;  %v1936_v4 = vpack.c.bf16 %v78_v3, %v77_v2  ;;  %v93_v5 = vld [vmem:[#allocation2] sm:$0xf]  ;;  %v80_v8 = vld [vmem:[%s2619_s2 + $0x8] sm:$0xff]  ;;  %v81_v11 = vld [vmem:[%s2619_s2 + $0x10] sm:$0xff]  ;;  %s2258_s19 = smov 32   ;;  %vm474_vm2 = vcmask 261120  }
  0x3a   :  { %v79_v7 = vld [vmem:[%s2619_s2] sm:$0xff]  ;;  %v82_v12 = vld [vmem:[%s2619_s2 + $0x18] sm:$0xff]  ;;  %v85_v30 = vld [vmem:[#allocation7 + $0x8] sm:$0xff]  ;;  %vm584_vm3 = vcmask 523264   ;;  %s2259_s22 = smov 96   ;;  %s2260_s4 = smov [#allocation8]  }
  0x3b   :  { %1937 = vmatpush3.bf16.msra.mxu0 %v1936_v4  ;;  %1940 = vmatpush3.bf16.msra.mxu1 %v1936_v4  ;;  %v2381_v10 = vpack.c.bf16 %v80_v8, %v79_v7  ;;  %v2392_v13 = vpack.c.bf16 %v82_v12, %v81_v11  ;;  %v2405_v14 = vld [vmem:[%s2620_s3] ss:$0 sm:$0xff]  ;;  %v175_v28 = vld [vmem:[#allocation2 + $0x4] sm:$0xf]  ;;  %v325_v31 = vld [vmem:[#allocation2 + $0xc] sm:$0xf] }
  0x3c   :  { %1941 = vmatprep.subr.bf16.mxu0 %v2255_v0  ;;  %1944 = vmatprep.subr.bf16.mxu1 %v2255_v0  ;;  %v84_v29 = vld [vmem:[#allocation7] sm:$0xff]  ;;  %v86_v33 = vld [vmem:[#allocation7 + $0x10] sm:$0xff]  ;;  %v87_v34 = vld [vmem:[#allocation7 + $0x18] sm:$0xff]  ;;  %vm1601_vm4 = vcmask 60416  }
  0x3d   :  { %v2416_v32 = vpack.c.bf16 %v85_v30, %v84_v29  ;;  %v2423_v35 = vpack.c.bf16 %v87_v34, %v86_v33  ;;  %v88_v36 = vld [vmem:[#allocation7 + $0x20] sm:$0xff]  ;;  %v89_v37 = vld [vmem:[#allocation7 + $0x28] sm:$0xff]  ;;  %v90_v40 = vld [vmem:[#allocation7 + $0x30] sm:$0xff] }
  0x3e   :  { %1744 = vmatmul.mubr.msk.f32.vlgmr.msra.gmra.mrb[0].mxu0 %vm100_vm1, %v93_v5  ;;  %1751 = vmatmul.mubr.msk.f32.vlgmr.msra.gmra.mrb[0].mxu1 %vm100_vm1, %v175_v28  ;;  %v2431_v39 = vpack.c.bf16 %v89_v37, %v88_v36  ;;  %v91_v41 = vld [vmem:[#allocation7 + $0x38] sm:$0xff] }
  0x3f   :  { %1943 = vmatpush3.bf16.msra.mxu0 %v1936_v4  ;;  %1757 = vmatprep.mubr.msk.f32.mxu0 %vm2256_vm0, %v2257_v1  ;;  %v2438_v42 = vpack.c.bf16 %v91_v41, %v90_v40  ;;  %v2468_v47 = vld [vmem:[%s2622_s5] ss:$0 sm:$0xff] }
  0x40   :  { %1947 = vmatprep.subr.bf16.mxu0 %v2255_v0  ;;  %1946 = vmatpush3.bf16.msra.mxu1 %v1936_v4 }
  0x41   :  { %1764 = vmatprep.mubr.msk.f32.mxu1 %vm2256_vm0, %v2257_v1  ;;  %1956 = vmatprep.subr.bf16.mxu1 %v2255_v0 }
  0x42   :  { %1758 = vmatmul.mubr.msk.f32.vlgmr.msra.gmra.mrb[2].mxu0 %vm100_vm1, %v250_v6 }
  0x43   :  { %1949 = vmatpush3.bf16.msra.mxu0 %v1936_v4  ;;  %1771 = vmatprep.mubr.msk.f32.mxu0 %vm2256_vm0, %v2257_v1 }
  0x44   :  { %1950 = vmatprep.subr.bf16.mxu0 %v2255_v0  ;;  %1765 = vmatmul.mubr.msk.f32.vlgmr.msra.gmra.mrb[2].mxu1 %vm100_vm1, %v325_v31 }
  0x45   :  { %1958 = vmatpush3.bf16.msra.mxu1 %v2416_v32  ;;  %1801 = vmatprep.mubr.msk.f32.mxu1 %vm2256_vm0, %v2257_v1 }
  0x46   :  { %1772 = vmatmul.mubr.msk.f32.vlgmr.msra.gmra.mrb[4].mxu0 %vm100_vm1, %v400_v9  ;;  %1959 = vmatprep.subr.bf16.mxu1 %v2255_v0 }
  0x47   :  { %1952 = vmatpush3.bf16.msra.mxu0 %v2381_v10  ;;  %1782 = vmatprep.mubr.msk.f32.mxu0 %vm2256_vm0, %v2257_v1 }
  0x48   :  { %1953 = vmatprep.subr.bf16.mxu0 %v2255_v0 }
  0x49   :  { %1961 = vmatpush3.bf16.msra.mxu1 %v2423_v35 }
  0x4a   :  { %1962 = vmatprep.subr.bf16.mxu1 %v2255_v0 }
  0x4b   :  { %1955 = vmatpush3.bf16.msra.mxu0 %v2392_v13 }
  0x4c   :  { %1974 = vmatprep.subr.bf16.mxu0 %v2255_v0 }
  0x4d   :  { %1964 = vmatpush3.bf16.msra.mxu1 %v2431_v39 }
  0x4e   :  { %1783 = vmatmul.mubr.f32.vlgmr.msra.gmra.mrb[0].mxu0 %v2257_v1  ;;  %1965 = vmatprep.subr.bf16.mxu1 %v2255_v0 }
  0x4f   :  { %1831 = vmatprep.mubr.msk.f32.mxu0 %vm2256_vm0, %v2257_v1  ;;  %1976 = vmatpush3.bf16.msra.mxu0 %v2416_v32 }
  0x50   :  { %1977 = vmatprep.subr.bf16.mxu0 %v2255_v0 }
  0x51   :  { %1967 = vmatpush3.bf16.msra.mxu1 %v2438_v42 }
  0x52   :  { %1968 = vmatprep.subr.bf16.mxu1 %v2255_v0 }
  0x53   :  { %1979 = vmatpush3.bf16.msra.mxu0 %v2423_v35 }
  0x54   :  { %1980 = vmatprep.subr.bf16.mxu0 %v2255_v0 }
  0x57   :  { %1982 = vmatpush3.bf16.msra.mxu0 %v2431_v39 }
  0x58   :  { %1983 = vmatprep.subr.bf16.mxu0 %v2255_v0 }
  0x5b   :  { %1985 = vmatpush3.bf16.msra.mxu0 %v2438_v42 }
  0x5c   :  { %1986 = vmatprep.subr.bf16.mxu0 %v2255_v0 }
 0x121   :  { %v544_v15 = vpop.f32.mrb[0].mxu0 }
 0x122   :  { %v2046_v16 = vadd.f32 %v2405_v14, %v544_v15  ;;  %v1784_v17 = vpop.f32.mrb[1].mxu0 }
 0x124   :  { %2074 = vtanh.f32 %v2046_v16  ;;  %v1625_v19 = vmul.f32 -1.442695, %v2046_v16 }
 0x126   :  { %2076 = vpow2.f32 %v1625_v19 }
 0x12e   :  { %v2075_v18 = vpop.eup %2074 }
 0x12f   :  { %558 = vrot.lane.b32.xlu0 %v2075_v18, %s2252_s1 }
 0x130   :  { %v2077_v20 = vpop.eup %2076 }
 0x131   :  { %v552_v21 = vadd.f32 1.0, %v2077_v20 }
 0x133   :  { %2078 = vrcp.f32 %v552_v21 }
 0x13d   :  { %v2079_v22 = vpop.eup %2078 }
 0x13e   :  { %v556_v25 = vmul.f32 0.0, %v2079_v22 }
 0x1a1   :  { %v559_v23 = vpop.permute.xlu0 %558 }
 0x1a2   :  { %v561_v24 = vmul.f32 %v2079_v22, %v559_v23 }
 0x1a4   :  { %563 = vrot.lane.b32.xlu0 %v561_v24, %s2258_s19 }
 0x216   :  { %v564_v26 = vpop.permute.xlu0 %563 }
 0x217   :  { %v2410_v27 = vadd.f32 %v564_v26, %v556_v25 }
 0x219   :  { %2080 = vtanh.f32 %v2410_v27 }
 0x223   :  { %v2081_v38 = vpop.eup %2080 }
 0x224   :  { %569 = vrot.lane.b32.xlu1 %v2081_v38, %s2252_s1 }
 0x296   :  { %v570_v43 = vpop.permute.xlu1 %569 }
 0x297   :  { %v572_v44 = vmul.f32 %v2079_v22, %v570_v43 }
 0x299   :  { %574 = vrot.lane.b32.xlu1 %v572_v44, %s2258_s19 }
 0x30b   :  { %v575_v45 = vpop.permute.xlu1 %574 }
 0x30c   :  { %v577_v46 = vsel %vm474_vm2, %v575_v45, 0.0 }
 0x30d   :  { %1802 = vmatmul.mubr.msk.f32.vlgmr.msra.gmra.mrb[4].mxu1 %vm584_vm3, %v577_v46 }
 0x30e   :  { %1970 = vmatpush3.bf16.msra.mxu1 %v2381_v10  ;;  %1812 = vmatprep.mubr.msk.f32.mxu1 %vm2256_vm0, %v2257_v1 }
 0x30f   :  { %1971 = vmatprep.subr.bf16.mxu1 %v2255_v0 }
 0x312   :  { %1973 = vmatpush3.bf16.msra.mxu1 %v2392_v13 }
 0x313   :  { %1992 = vmatprep.subr.bf16.mxu1 %v2255_v0 }
 0x315   :  { %1813 = vmatmul.mubr.msk.f32.vlgmr.msra.gmra.mrb[0].mxu1 %vm474_vm2, %v575_v45 }
 0x316   :  { %1994 = vmatpush3.bf16.msra.mxu1 %v2416_v32  ;;  %1861 = vmatprep.mubr.msk.f32.mxu1 %vm2256_vm0, %v2257_v1 }
 0x317   :  { %1995 = vmatprep.subr.bf16.mxu1 %v2255_v0 }
 0x31a   :  { %1997 = vmatpush3.bf16.msra.mxu1 %v2423_v35 }
 0x31b   :  { %1998 = vmatprep.subr.bf16.mxu1 %v2255_v0 }
 0x31e   :  { %2000 = vmatpush3.bf16.msra.mxu1 %v2431_v39 }
 0x31f   :  { %2001 = vmatprep.subr.bf16.mxu1 %v2255_v0 }
 0x322   :  { %2003 = vmatpush3.bf16.msra.mxu1 %v2438_v42 }
 0x323   :  { %2004 = vmatprep.subr.bf16.mxu1 %v2255_v0 }
 0x3e0   :  { %v654_v48 = vpop.f32.mrb[4].mxu1 }
 0x3e1   :  { %v655_v49 = vadd.f32 %v2468_v47, %v654_v48  ;;  %v1803_v50 = vpop.f32.mrb[5].mxu1 }
 0x3e3   :  { %2082 = vtanh.f32 %v655_v49  ;;  %v1628_v56 = vmul.f32 -1.442695, %v655_v49 }
 0x3e8   :  { %v750_v51 = vpop.f32.mrb[0].mxu1 }
 0x3e9   :  { %v2047_v52 = vadd.f32 %v2405_v14, %v750_v51  ;;  %v1814_v53 = vpop.f32.mrb[1].mxu1 }
 0x3eb   :  { %2084 = vtanh.f32 %v2047_v52  ;;  %v1630_v57 = vmul.f32 -1.442695, %v2047_v52 }
 0x3ec   :  { %2086 = vpow2.f32 %v1628_v56 }
 0x3ed   :  { %v2083_v54 = vpop.eup %2082  ;;  %2088 = vpow2.f32 %v1630_v57 }
 0x3ee   :  { %667 = vrot.lane.b32.xlu0 %v2083_v54, %s2252_s1 }
 0x3f5   :  { %v2085_v55 = vpop.eup %2084 }
 0x3f6   :  { %764 = vrot.lane.b32.xlu1 %v2085_v55, %s2252_s1  ;;  %v2087_v58 = vpop.eup %2086 }
 0x3f7   :  { %v661_v59 = vadd.f32 1.0, %v2087_v58  ;;  %v2089_v60 = vpop.eup %2088 }
 0x3f8   :  { %v758_v61 = vadd.f32 1.0, %v2089_v60 }
 0x3f9   :  { %2090 = vrcp.f32 %v661_v59 }
 0x3fa   :  { %2092 = vrcp.f32 %v758_v61 }
 0x403   :  { %v2091_v62 = vpop.eup %2090 }
 0x404   :  { %v2093_v3 = vpop.eup %2092  ;;  %v665_v6 = vmul.f32 0.0, %v2091_v62 }
 0x405   :  { %v762_v9 = vmul.f32 %v2093_v3, %v2410_v27 }
 0x460   :  { %v668_v63 = vpop.permute.xlu0 %667 }
 0x461   :  { %v670_v2 = vmul.f32 %v2091_v62, %v668_v63 }
 0x463   :  { %672 = vrot.lane.b32.xlu0 %v670_v2, %s2258_s19 }
 0x468   :  { %v765_v4 = vpop.permute.xlu1 %764 }
 0x469   :  { %v767_v5 = vmul.f32 %v2093_v3, %v765_v4 }
 0x46b   :  { %769 = vrot.lane.b32.xlu1 %v767_v5, %s2258_s19 }
 0x4d5   :  { %v673_v7 = vpop.permute.xlu0 %672 }
 0x4d6   :  { %v2476_v8 = vadd.f32 %v673_v7, %v665_v6 }
 0x4d8   :  { %2094 = vtanh.f32 %v2476_v8 }
 0x4dd   :  { %v770_v11 = vpop.permute.xlu1 %769 }
 0x4de   :  { %v2480_v12 = vadd.f32 %v770_v11, %v762_v9 }
 0x4e0   :  { %2096 = vtanh.f32 %v2480_v12 }
 0x4e2   :  { %v2095_v15 = vpop.eup %2094 }
 0x4e3   :  { %678 = vrot.lane.b32.xlu0 %v2095_v15, %s2252_s1 }
 0x4ea   :  { %v2097_v16 = vpop.eup %2096 }
 0x4eb   :  { %775 = vrot.lane.b32.xlu1 %v2097_v16, %s2252_s1 }
 0x555   :  { %v679_v17 = vpop.permute.xlu0 %678 }
 0x556   :  { %v681_v18 = vmul.f32 %v2091_v62, %v679_v17 }
 0x558   :  { %784 = vrot.lane.b32.xlu1 %v681_v18, %s2252_s1 }
 0x55d   :  { %v776_v19 = vpop.permute.xlu1 %775 }
 0x55e   :  { %v778_v20 = vmul.f32 %v2093_v3, %v776_v19 }
 0x560   :  { %780 = vrot.lane.b32.xlu0 %v778_v20, %s2258_s19 }
 0x5ca   :  { %v785_v21 = vpop.permute.xlu1 %784 }
 0x5d2   :  { %v781_v22 = vpop.permute.xlu0 %780 }
 0x5d3   :  { %v787_v23 = vsel %vm474_vm2, %v781_v22, %v785_v21 }
 0x5d4   :  { %1832 = vmatmul.mubr.msk.f32.vlgmr.msra.gmra.mrb[6].mxu0 %vm584_vm3, %v787_v23 }
 0x5d5   :  { %1988 = vmatpush3.bf16.msra.mxu0 %v2381_v10  ;;  %1842 = vmatprep.mubr.msk.f32.mxu0 %vm2256_vm0, %v2257_v1 }
 0x5d6   :  { %1989 = vmatprep.subr.bf16.mxu0 %v2255_v0 }
 0x5d9   :  { %1991 = vmatpush3.bf16.msra.mxu0 %v2392_v13 }
 0x5da   :  { %2010 = vmatprep.subr.bf16.mxu0 %v2255_v0 }
 0x5dc   :  { %1843 = vmatmul.mubr.msk.f32.vlgmr.msra.gmra.mrb[2].mxu0 %vm474_vm2, %v781_v22 }
 0x5dd   :  { %2012 = vmatpush3.bf16.msra.mxu0 %v2416_v32  ;;  %1891 = vmatprep.mubr.msk.f32.mxu0 %vm2256_vm0, %v2257_v1 }
 0x5de   :  { %2013 = vmatprep.subr.bf16.mxu0 %v2255_v0 }
 0x5e1   :  { %2015 = vmatpush3.bf16.msra.mxu0 %v2423_v35 }
 0x5e2   :  { %2016 = vmatprep.subr.bf16.mxu0 %v2255_v0 }
 0x5e5   :  { %2018 = vmatpush3.bf16.msra.mxu0 %v2431_v39 }
 0x5e6   :  { %2019 = vmatprep.subr.bf16.mxu0 %v2255_v0 }
 0x5e9   :  { %2021 = vmatpush3.bf16.msra.mxu0 %v2438_v42 }
 0x5ea   :  { %2022 = vmatprep.subr.bf16.mxu0 %v2255_v0 }
 0x6a7   :  { %v857_v24 = vpop.f32.mrb[6].mxu0 }
 0x6a8   :  { %v858_v25 = vadd.f32 %v2468_v47, %v857_v24  ;;  %v1833_v26 = vpop.f32.mrb[7].mxu0 }
 0x6aa   :  { %2098 = vtanh.f32 %v858_v25  ;;  %v1632_v33 = vmul.f32 -1.442695, %v858_v25 }
 0x6af   :  { %v953_v27 = vpop.f32.mrb[2].mxu0 }
 0x6b0   :  { %v2048_v28 = vadd.f32 %v2405_v14, %v953_v27  ;;  %v1844_v29 = vpop.f32.mrb[3].mxu0 }
 0x6b2   :  { %2100 = vtanh.f32 %v2048_v28  ;;  %v1634_v34 = vmul.f32 -1.442695, %v2048_v28 }
 0x6b3   :  { %2102 = vpow2.f32 %v1632_v33 }
 0x6b4   :  { %v2099_v30 = vpop.eup %2098  ;;  %2104 = vpow2.f32 %v1634_v34 }
 0x6b5   :  { %870 = vrot.lane.b32.xlu0 %v2099_v30, %s2252_s1 }
 0x6bc   :  { %v2101_v31 = vpop.eup %2100 }
 0x6bd   :  { %967 = vrot.lane.b32.xlu1 %v2101_v31, %s2252_s1  ;;  %v2103_v36 = vpop.eup %2102 }
 0x6be   :  { %v864_v37 = vadd.f32 1.0, %v2103_v36  ;;  %v2105_v38 = vpop.eup %2104 }
 0x6bf   :  { %v961_v40 = vadd.f32 1.0, %v2105_v38 }
 0x6c0   :  { %2106 = vrcp.f32 %v864_v37 }
 0x6c1   :  { %2108 = vrcp.f32 %v961_v40 }
 0x6ca   :  { %v2107_v41 = vpop.eup %2106 }
 0x6cb   :  { %v2109_v45 = vpop.eup %2108  ;;  %v868_v49 = vmul.f32 %v2107_v41, %v2476_v8 }
 0x6cc   :  { %v965_v52 = vmul.f32 %v2109_v45, %v2480_v12 }
 0x727   :  { %v871_v43 = vpop.permute.xlu0 %870 }
 0x728   :  { %v873_v44 = vmul.f32 %v2107_v41, %v871_v43 }
 0x72a   :  { %875 = vrot.lane.b32.xlu0 %v873_v44, %s2258_s19 }
 0x72f   :  { %v968_v46 = vpop.permute.xlu1 %967 }
 0x730   :  { %v970_v48 = vmul.f32 %v2109_v45, %v968_v46 }
 0x732   :  { %972 = vrot.lane.b32.xlu1 %v970_v48, %s2258_s19 }
 0x79c   :  { %v876_v50 = vpop.permute.xlu0 %875 }
 0x79d   :  { %v2513_v51 = vadd.f32 %v876_v50, %v868_v49 }
 0x79f   :  { %2110 = vtanh.f32 %v2513_v51 }
 0x7a4   :  { %v973_v53 = vpop.permute.xlu1 %972 }
 0x7a5   :  { %v2517_v54 = vadd.f32 %v973_v53, %v965_v52 }
 0x7a7   :  { %2112 = vtanh.f32 %v2517_v54 }
 0x7a9   :  { %v2111_v55 = vpop.eup %2110 }
 0x7aa   :  { %881 = vrot.lane.b32.xlu0 %v2111_v55, %s2252_s1 }
 0x7b1   :  { %v2113_v56 = vpop.eup %2112 }
 0x7b2   :  { %978 = vrot.lane.b32.xlu1 %v2113_v56, %s2252_s1 }
 0x81c   :  { %v882_v57 = vpop.permute.xlu0 %881 }
 0x81d   :  { %v884_v58 = vmul.f32 %v2107_v41, %v882_v57 }
 0x81f   :  { %987 = vrot.lane.b32.xlu1 %v884_v58, %s2252_s1 }
 0x824   :  { %v979_v59 = vpop.permute.xlu1 %978 }
 0x825   :  { %v981_v60 = vmul.f32 %v2109_v45, %v979_v59 }
 0x827   :  { %983 = vrot.lane.b32.xlu0 %v981_v60, %s2258_s19 }
 0x891   :  { %v988_v61 = vpop.permute.xlu1 %987 }
 0x899   :  { %v984_v62 = vpop.permute.xlu0 %983 }
 0x89a   :  { %v990_v63 = vsel %vm474_vm2, %v984_v62, %v988_v61 }
 0x89b   :  { %1862 = vmatmul.mubr.msk.f32.vlgmr.msra.gmra.mrb[6].mxu1 %vm584_vm3, %v990_v63 }
 0x89c   :  { %2006 = vmatpush3.bf16.msra.mxu1 %v2381_v10  ;;  %1872 = vmatprep.mubr.msk.f32.mxu1 %vm2256_vm0, %v2257_v1 }
 0x89d   :  { %2007 = vmatprep.subr.bf16.mxu1 %v2255_v0 }
 0x8a0   :  { %2009 = vmatpush3.bf16.msra.mxu1 %v2392_v13 }
 0x8a1   :  { %2028 = vmatprep.subr.bf16.mxu1 %v2255_v0 }
 0x8a3   :  { %1873 = vmatmul.mubr.msk.f32.vlgmr.msra.gmra.mrb[2].mxu1 %vm474_vm2, %v984_v62 }
 0x8a4   :  { %2030 = vmatpush3.bf16.msra.mxu1 %v2416_v32  ;;  %1921 = vmatprep.mubr.msk.f32.mxu1 %vm2256_vm0, %v2257_v1 }
 0x8a5   :  { %2031 = vmatprep.subr.bf16.mxu1 %v2255_v0 }
 0x8a8   :  { %2033 = vmatpush3.bf16.msra.mxu1 %v2423_v35 }
 0x8a9   :  { %2034 = vmatprep.subr.bf16.mxu1 %v2255_v0 }
 0x8ac   :  { %2036 = vmatpush3.bf16.msra.mxu1 %v2431_v39 }
 0x8ad   :  { %2037 = vmatprep.subr.bf16.mxu1 %v2255_v0 }
 0x8b0   :  { %2039 = vmatpush3.bf16.msra.mxu1 %v2438_v42 }
 0x96e   :  { %v1060_v2 = vpop.f32.mrb[6].mxu1 }
 0x96f   :  { %v1061_v3 = vadd.f32 %v2468_v47, %v1060_v2  ;;  %v1863_v4 = vpop.f32.mrb[7].mxu1 }
 0x971   :  { %2114 = vtanh.f32 %v1061_v3  ;;  %v1636_v39 = vmul.f32 -1.442695, %v1061_v3 }
 0x976   :  { %v1156_v32 = vpop.f32.mrb[2].mxu1 }
 0x977   :  { %v2049_v5 = vadd.f32 %v2405_v14, %v1156_v32  ;;  %v1874_v6 = vpop.f32.mrb[3].mxu1 }
 0x979   :  { %2116 = vtanh.f32 %v2049_v5  ;;  %v1638_v8 = vmul.f32 -1.442695, %v2049_v5 }
 0x97a   :  { %2118 = vpow2.f32 %v1636_v39 }
 0x97b   :  { %v2115_v7 = vpop.eup %2114  ;;  %2120 = vpow2.f32 %v1638_v8 }
 0x97c   :  { %1073 = vrot.lane.b32.xlu0 %v2115_v7, %s2252_s1 }
 0x983   :  { %v2117_v35 = vpop.eup %2116 }
 0x984   :  { %1170 = vrot.lane.b32.xlu1 %v2117_v35, %s2252_s1  ;;  %v2119_v42 = vpop.eup %2118 }
 0x985   :  { %v1067_v9 = vadd.f32 1.0, %v2119_v42  ;;  %v2121_v11 = vpop.eup %2120 }
 0x986   :  { %v1164_v12 = vadd.f32 1.0, %v2121_v11 }
 0x987   :  { %2122 = vrcp.f32 %v1067_v9 }
 0x988   :  { %2124 = vrcp.f32 %v1164_v12 }
 0x991   :  { %v2123_v15 = vpop.eup %2122 }
 0x992   :  { %v2125_v18 = vpop.eup %2124  ;;  %v1071_v21 = vmul.f32 %v2123_v15, %v2513_v51 }
 0x993   :  { %v1168_v24 = vmul.f32 %v2125_v18, %v2517_v54 }
 0x9ee   :  { %v1074_v16 = vpop.permute.xlu0 %1073 }
 0x9ef   :  { %v1076_v17 = vmul.f32 %v2123_v15, %v1074_v16 }
 0x9f1   :  { %1078 = vrot.lane.b32.xlu0 %v1076_v17, %s2258_s19 }
 0x9f6   :  { %v1171_v19 = vpop.permute.xlu1 %1170 }
 0x9f7   :  { %v1173_v20 = vmul.f32 %v2125_v18, %v1171_v19  ;;  %v1645_v19 = vld [vmem:[%s2623_s6] ss:$0 sm:$0xff] }
 0x9f9   :  { %1175 = vrot.lane.b32.xlu1 %v1173_v20, %s2258_s19 }
 0xa63   :  { %v1079_v22 = vpop.permute.xlu0 %1078 }
 0xa64   :  { %v1081_v23 = vadd.f32 %v1079_v22, %v1071_v21  ;;  %v1515_v22 = vld [vmem:[%s2625_s8] sm:$0xff] }
 0xa66   :  { %2126 = vtanh.f32 %v1081_v23 }
 0xa6b   :  { %v1176_v25 = vpop.permute.xlu1 %1175 }
 0xa6c   :  { %v1178_v26 = vadd.f32 %v1176_v25, %v1168_v24  ;;  %v1517_v24 = vld [vmem:[%s2625_s8 + $0x10] sm:$0xff] }
 0xa6e   :  { %2128 = vtanh.f32 %v1178_v26 }
 0xa70   :  { %v2127_v27 = vpop.eup %2126 }
 0xa71   :  { %1084 = vrot.lane.b32.xlu0 %v2127_v27, %s2252_s1 }
 0xa78   :  { %v2129_v28 = vpop.eup %2128 }
 0xa79   :  { %1181 = vrot.lane.b32.xlu1 %v2129_v28, %s2252_s1 }
 0xae3   :  { %v1085_v29 = vpop.permute.xlu0 %1084 }
 0xae4   :  { %v1087_v30 = vmul.f32 %v2123_v15, %v1085_v29  ;;  %v1646_v29 = vld [vmem:[%s2624_s7] ss:$0 sm:$0xff]  ;;  %s1609_s7 = sshll.u32 %s2260_s4, 4  ;;  %s1610_s7 = int_to_ptr.vmem [resolvable:$true] %s1609_s7 }
 0xae5   :  { %s2220_s23 = scalar_lea.vmem %s1610_s7, 64  ;;  %p2225_p11 = scmp.lt.s32.totalorder %s1610_s7, %s1610_s7 }
 0xae6   :  { %1190 = vrot.lane.b32.xlu1 %v1087_v30, %s2252_s1  ;;  %p2221_p10 = scmp.ne.s32.totalorder %s1610_s7, %s2220_s23  ;;  %p2226_p12 = scmp.lt.s32.totalorder %s2220_s23, %s2220_s23 }
 0xae8   :  { %p2227_p13 = por %p2226_p12, %p2225_p11 }
 0xaea   :  { %p2228_p0 = pnand %p2227_p13, %p2221_p10 }
 0xaeb   :  { %v1182_v31 = vpop.permute.xlu1 %1181 }
 0xaec   :  { %v1184_v33 = vmul.f32 %v2125_v18, %v1182_v31 }
 0xaee   :  { %1186 = vrot.lane.b32.xlu0 %v1184_v33, %s2258_s19 }
 0xb58   :  { %v1191_v34 = vpop.permute.xlu1 %1190 }
 0xb60   :  { %v1187_v36 = vpop.permute.xlu0 %1186 }
 0xb61   :  { %v1193_v37 = vsel %vm474_vm2, %v1187_v36, %v1191_v34 }
 0xb62   :  { %1892 = vmatmul.mubr.msk.f32.vlgmr.msra.gmra.mrb[8].mxu0 %vm584_vm3, %v1193_v37 }
 0xb63   :  { %2024 = vmatpush3.bf16.msra.mxu0 %v2381_v10  ;;  %1902 = vmatprep.mubr.msk.f32.mxu0 %vm2256_vm0, %v2257_v1 }
 0xb64   :  { %2025 = vmatprep.subr.bf16.mxu0 %v2255_v0 }
 0xb67   :  { %2027 = vmatpush3.bf16.msra.mxu0 %v2392_v13 }
 0xb68   :  { %2040 = vmatprep.subr.bf16.mxu0 %v2255_v0 }
 0xb6a   :  { %1903 = vmatmul.mubr.msk.f32.vlgmr.msra.gmra.mrb[4].mxu0 %vm474_vm2, %v1187_v36 }
 0xb6b   :  { %1932 = vmatprep.mubr.msk.f32.mxu0 %vm2256_vm0, %v2257_v1 }
 0xc35   :  { %v1263_v38 = vpop.f32.mrb[8].mxu0 }
 0xc36   :  { %v1264_v40 = vadd.f32 %v2468_v47, %v1263_v38  ;;  %v1893_v41 = vpop.f32.mrb[9].mxu0 }
 0xc38   :  { %2130 = vtanh.f32 %v1264_v40  ;;  %v1640_v46 = vmul.f32 -1.442695, %v1264_v40 }
 0xc3d   :  { %v1359_v10 = vpop.f32.mrb[4].mxu0 }
 0xc3e   :  { %v2050_v43 = vadd.f32 %v2405_v14, %v1359_v10  ;;  %v1904_v44 = vpop.f32.mrb[5].mxu0 }
 0xc40   :  { %2132 = vtanh.f32 %v2050_v43  ;;  %v1642_v48 = vmul.f32 -1.442695, %v2050_v43 }
 0xc41   :  { %2134 = vpow2.f32 %v1640_v46 }
 0xc42   :  { %v2131_v45 = vpop.eup %2130  ;;  %2136 = vpow2.f32 %v1642_v48 }
 0xc43   :  { %1276 = vrot.lane.b32.xlu0 %v2131_v45, %s2252_s1 }
 0xc4a   :  { %v2133_v13 = vpop.eup %2132 }
 0xc4b   :  { %1373 = vrot.lane.b32.xlu1 %v2133_v13, %s2252_s1  ;;  %v2135_v1 = vpop.eup %2134 }
 0xc4c   :  { %v1270_v49 = vadd.f32 1.0, %v2135_v1  ;;  %v2137_v50 = vpop.eup %2136 }
 0xc4d   :  { %v1367_v51 = vadd.f32 1.0, %v2137_v50 }
 0xc4e   :  { %2138 = vrcp.f32 %v1270_v49 }
 0xc4f   :  { %2140 = vrcp.f32 %v1367_v51 }
 0xc58   :  { %v2139_v52 = vpop.eup %2138 }
 0xc59   :  { %v2141_v54 = vpop.eup %2140  ;;  %v1274_v57 = vmul.f32 %v2139_v52, %v1081_v23  ;;  %v1516_v23 = vld [vmem:[%s2625_s8 + $0x8] sm:$0xff] }
 0xc5a   :  { %v1371_v60 = vmul.f32 %v2141_v54, %v1178_v26  ;;  %v2041_v25 = vpack.c.bf16 %v1516_v23, %v1515_v22  ;;  %v1518_v26 = vld [vmem:[%s2625_s8 + $0x18] sm:$0xff] }
 0xc5b   :  { %v2044_v27 = vpack.c.bf16 %v1518_v26, %v1517_v24 }
 0xc5c   :  { %2042 = vmatpush3.bf16.msra.mxu0 %v2041_v25 }
 0xc5d   :  { %2043 = vmatprep.subr.bf16.mxu0 %v2255_v0  ;;  %v1647_v0 = vld [vmem:[%s2626_s9] ss:$0 sm:$0xff] }
 0xc60   :  { %2045 = vmatpush3.bf16.msra.mxu0 %v2044_v27 }
 0xcb5   :  { %v1277_v14 = vpop.permute.xlu0 %1276 }
 0xcb6   :  { %v1279_v53 = vmul.f32 %v2139_v52, %v1277_v14 }
 0xcb8   :  { %1281 = vrot.lane.b32.xlu0 %v1279_v53, %s2258_s19 }
 0xcbd   :  { %v1374_v55 = vpop.permute.xlu1 %1373 }
 0xcbe   :  { %v1376_v56 = vmul.f32 %v2141_v54, %v1374_v55 }
 0xcc0   :  { %1378 = vrot.lane.b32.xlu1 %v1376_v56, %s2258_s19 }
 0xd2a   :  { %v1282_v58 = vpop.permute.xlu0 %1281 }
 0xd2b   :  { %v1284_v59 = vadd.f32 %v1282_v58, %v1274_v57 }
 0xd2d   :  { %2142 = vtanh.f32 %v1284_v59 }
 0xd32   :  { %v1379_v61 = vpop.permute.xlu1 %1378 }
 0xd33   :  { %v1381_v62 = vadd.f32 %v1379_v61, %v1371_v60 }
 0xd35   :  { %2144 = vtanh.f32 %v1381_v62 }
 0xd37   :  { %v2143_v63 = vpop.eup %2142 }
 0xd38   :  { %1287 = vrot.lane.b32.xlu0 %v2143_v63, %s2252_s1 }
 0xd3f   :  { %v2145_v2 = vpop.eup %2144 }
 0xd40   :  { %1384 = vrot.lane.b32.xlu1 %v2145_v2, %s2252_s1 }
 0xdaa   :  { %v1288_v3 = vpop.permute.xlu0 %1287 }
 0xdab   :  { %v1290_v4 = vmul.f32 %v2139_v52, %v1288_v3 }
 0xdad   :  { %1393 = vrot.lane.b32.xlu1 %v1290_v4, %s2252_s1 }
 0xdb2   :  { %v1385_v32 = vpop.permute.xlu1 %1384 }
 0xdb3   :  { %v1387_v5 = vmul.f32 %v2141_v54, %v1385_v32 }
 0xdb5   :  { %1389 = vrot.lane.b32.xlu0 %v1387_v5, %s2258_s19 }
 0xe1f   :  { %v1394_v6 = vpop.permute.xlu1 %1393 }
 0xe27   :  { %v1390_v7 = vpop.permute.xlu0 %1389 }
 0xe28   :  { %v1396_v35 = vsel %vm474_vm2, %v1390_v7, %v1394_v6 }
 0xe29   :  { %1922 = vmatmul.mubr.msk.f32.vlgmr.msra.gmra.mrb[8].mxu1 %vm584_vm3, %v1396_v35 }
 0xefc   :  { %v1466_v39 = vpop.f32.mrb[8].mxu1 }
 0xefd   :  { %v1467_v8 = vadd.f32 %v2468_v47, %v1466_v39  ;;  %v1923_v42 = vpop.f32.mrb[9].mxu1 }
 0xeff   :  { %2146 = vtanh.f32 %v1467_v8  ;;  %v1644_v11 = vmul.f32 -1.442695, %v1467_v8 }
 0xf01   :  { %2148 = vpow2.f32 %v1644_v11 }
 0xf09   :  { %v2147_v9 = vpop.eup %2146 }
 0xf0a   :  { %1479 = vrot.lane.b32.xlu0 %v2147_v9, %s2252_s1 }
 0xf0b   :  { %v2149_v12 = vpop.eup %2148 }
 0xf0c   :  { %v1473_v15 = vadd.f32 1.0, %v2149_v12 }
 0xf0e   :  { %2150 = vrcp.f32 %v1473_v15 }
 0xf18   :  { %v2151_v16 = vpop.eup %2150 }
 0xf19   :  { %v1477_v47 = vmul.f32 %v2151_v16, %v1284_v59 }
 0xf7c   :  { %v1480_v17 = vpop.permute.xlu0 %1479 }
 0xf7d   :  { %v1482_v18 = vmul.f32 %v2151_v16, %v1480_v17 }
 0xf7f   :  { %1484 = vrot.lane.b32.xlu1 %v1482_v18, %s2258_s19 }
 0xf83   :  { %1500 = vrot.lane.b32.xlu1 %v1645_v19, %s2259_s22 }
 0xff1   :  { %v1485_v20 = vpop.permute.xlu1 %1484 }
 0xff2   :  { %v1487_v21 = vadd.f32 %v1485_v20, %v1477_v47 }
 0xff4   :  { %2152 = vtanh.f32 %v1487_v21 }
 0xff5   :  { %v1501_v31 = vpop.permute.xlu1 %1500 }
 0xffe   :  { %v2153_v28 = vpop.eup %2152 }
 0xfff   :  { %1490 = vrot.lane.b32.xlu0 %v2153_v28, %s2252_s1 }
0x1003   :  { %1510 = vrot.lane.b32.xlu0 %v1646_v29, %s2259_s22 }
0x1071   :  { %v1491_v30 = vpop.permute.xlu0 %1490 }
0x1072   :  { %v1493_v33 = vmul.f32 %v2151_v16, %v1491_v30 }
0x1074   :  { %v1503_v34 = vmul.f32 %v1501_v31, %v1493_v33 }
0x1075   :  { %v1511_v36 = vpop.permute.xlu0 %1510 }
0x1076   :  { %v1513_v37 = vadd.f32 %v1511_v36, %v1503_v34 }
0x1078   :  { %v1514_v38 = vmax.f32 %v1513_v37, 0.0 }
0x107a   :  { %1527 = vrot.lane.b32.xlu1 %v1514_v38, %s2258_s19 }
0x10ec   :  { %v1528_v40 = vpop.permute.xlu1 %1527 }
0x10ed   :  { %1933 = vmatmul.mubr.msk.f32.vlgmr.msra.gmra.mrb[10].mxu0 %vm474_vm2, %v1528_v40 }
0x11c0   :  { %v1597_v41 = vpop.f32.mrb[10].mxu0 }
0x11c1   :  { %v1598_v10 = vadd.f32 %v1647_v0, %v1597_v41  ;;  %v1934_v43 = vpop.f32.mrb[11].mxu0 }
0x11c3   :  { %1602 = vst.msk [vmem:[#allocation8] sm:$0xf] %vm1601_vm4, %v1598_v10 }
0x11c4   :  { %2231 = shalt.err (!%p2228_p0)
}
0x11c5   :  { %s2232_s15 = scalar_lea.hbm %s2627_s10, 64 }
0x11c6   :  { %p2233_p1 = scmp.ne.s32.totalorder %s2627_s10, %s2232_s15  ;;  %p2236_p2 = scmp.lt.u32.totalorder %s2232_s15, %s2627_s10 }
0x11c8   :  { %p2238_p3 = pnand %p2236_p2, %p2233_p1 }
0x11ca   :  { %2241 = shalt.err (!%p2238_p3)
}
0x11cb   :  { %1612 = dma.vmem_to_hbm [thread:$0]  %s1610_s7, 64, %s2627_s10, [#allocation4]  }
0x11cc   :  { %2246 = dma.done.wait [#allocation4], 64  }
0x11cd   :  { %2247 = vsyncadd [#allocation4], 4294967232 }
0x11ce   :  { %1616 = vsyncpa [#allocation3], 1 }
0x11cf   :  { %1617 = vsyncpa [#allocation6], 1 }
0x11d0   :  { %1618 = vsyncpa [#allocation4], 1 }

</bundles_post_ra>
